<compile_context>
chip_gen: v7x
topology: tpu7x:2x2x1
jax: 0.10.0
libtpu: 0.0.40
codegen_flags: <defaults>
</compile_context>

<pallas_src>
import functools

import jax
import jax.numpy as jnp
from jax.experimental import pallas as pl
from jax.experimental.pallas import tpu as pltpu


def ef_attention_kernel(taps_ref, bias_ref, w_ref, x_ref, o_ref, *, spatial_fma):
    Bt, C, HWp = x_ref.shape
    k = taps_ref.shape[0]
    pad = (k - 1) // 2

    # ---- channel attention ------------------------------------------------
    # GAP (sum over lanes; 1/HW is folded into the conv taps in the wrapper).
    s = jnp.sum(x_ref[...], axis=-1, keepdims=True, dtype=jnp.float32)      # (Bt, C, 1)

    # k-tap channel conv with zero padding; halo lives in registers
    # (tiny concat + static shifted slices, no VMEM scratch roundtrip).
    zpad = jnp.zeros((Bt, pad, 1), jnp.float32)
    sp = jnp.concatenate([zpad, s, zpad], axis=1)                           # (Bt, C+2p, 1)
    y = bias_ref[0]
    for t in range(k):                                                      # static unroll (k=3)
        y = y + taps_ref[t] * sp[:, t:t + C, :]
    ac = jax.nn.sigmoid(y)                                                  # (Bt, C, 1) f32

    # ---- spatial attention (1x1 conv over channels) -------------------------
    if spatial_fma:
        # Small C: fused per-channel FMA straight from the VMEM input buffer,
        # no full-size x*w temporary.
        q_log = w_ref[0] * x_ref[:, 0:1, :].astype(jnp.float32)
        for c in range(1, C):
            q_log = q_log + w_ref[c] * x_ref[:, c:c + 1, :].astype(jnp.float32)
    else:
        # Large-C fallback: multiply + sublane reduce.
        # TODO(synk): route this channel contraction through the MXU (dot_general) when C >= 128.
        q_log = jnp.sum(x_ref[...] * w_ref[...].astype(o_ref.dtype), axis=1,
                        keepdims=True, dtype=jnp.float32)
    q = jax.nn.sigmoid(q_log)                                               # (Bt, 1, HWp) f32

    # ---- x * channel_attn + x * spatial_attn == x * (ac + q) ---------------
    # attn is built in the output dtype: the big tile sees one load stream,
    # one broadcast add, one multiply, one store in the packed dtype.
    attn = ac.astype(o_ref.dtype) + q.astype(o_ref.dtype)                   # (Bt, C, HWp)
    o_ref[...] = x_ref[...] * attn


def ef_attention(x_nchw, w1d, b1d, w1x1, kernel_size=3):
    B, C, H, W = x_nchw.shape
    assert kernel_size % 2 == 1, "odd kernel_size expected (PyTorch 'same' padding)"
    HW = H * W
    HWp = ((HW + 127) // 128) * 128            # lane-dense (128-aligned) spatial dim
    pad_hw = HWp - HW

    x = x_nchw.reshape(B, C, HW)
    if pad_hw:
        # Zero-pad spatial lanes: GAP uses the true 1/HW (folded into taps) and the
        # padded lanes are zero, so sums are unchanged; padded q values are sliced off.
        x = jnp.pad(x, ((0, 0), (0, 0), (0, pad_hw)))
    # TODO(synk): for small C, fold batch into the sublane axis (reshape to (B//g, g*C, HWp))
    # to fill vregs; needs per-group conv masks and a per-group spatial reduce.

    # Fold 1/HW (GAP mean) into the conv taps; bias stays unscaled.
    taps = (w1d.astype(jnp.float32) / float(HW)).reshape(kernel_size)
    bias = b1d.reshape(1).astype(jnp.float32)

    spatial_fma = C <= 128
    if spatial_fma:
        w_arg = w1x1.reshape(C).astype(jnp.float32)
        w_spec = pl.BlockSpec(memory_space=pltpu.SMEM)
    else:
        w_arg = w1x1.reshape(1, C, 1).astype(jnp.float32)
        w_spec = pl.BlockSpec((1, C, 1), lambda b: (0, 0, 0))

    # --- generation-aware tiling / VMEM budget -------------------------------
    try:
        vmem_cap = pltpu.get_tpu_info().vmem_capacity_bytes
    except Exception:
        vmem_cap = 64 * 2**20                   # conservative (v7x-sized) fallback
    small_vmem = vmem_cap <= 64 * 2**20         # v7x: 64 MiB/core, 2 TCs per chip

    itemsize = x.dtype.itemsize
    img_bytes = C * HWp * itemsize
    # Big blocks on 128-MiB parts (v5e/v6e); ~5 MiB blocks on v7x so 4x block
    # stays well under the ~48 MiB cap.
    block_target = (5 * 2**20) if small_vmem else (12 * 2**20)
    bt_cap = max(1, block_target // max(img_bytes, 1))

    divisors = [d for d in range(1, B + 1) if B % d == 0 and d <= bt_cap]
    # v7x: prefer an even grid with >= 4 steps (2 TCs x >= 2 pipeline steps each);
    # v5e/v6e (single TC): >= 2 steps is enough, keep blocks as big as possible.
    prefs = ([lambda g: g >= 4 and g % 2 == 0] if small_vmem else []) + \
            [lambda g: g >= 2, lambda g: True]
    Bt = 1
    for pref in prefs:
        cands = [d for d in divisors if pref(B // d)]
        if cands:
            Bt = max(cands)
            break
    grid = (B // Bt,)
    block_bytes = Bt * img_bytes
    # TODO(synk): for tiny B on v7x add a second (HW-chunk) grid axis so both TCs pipeline.

    # in + out blocks double-buffered plus margin, capped at ~75% of physical VMEM.
    vmem_limit = int(min(int(vmem_cap * 0.75),
                         max(4 * block_bytes + (4 << 20), 16 * 2**20)))

    cost = pl.CostEstimate(
        flops=6 * B * C * HWp,
        transcendentals=2 * B * (C + HWp),
        bytes_accessed=2 * B * C * HWp * itemsize,
    )

    kernel = functools.partial(ef_attention_kernel, spatial_fma=spatial_fma)
    out = pl.pallas_call(
        kernel,
        out_shape=jax.ShapeDtypeStruct((B, C, HWp), x.dtype),
        grid=grid,
        in_specs=[
            pl.BlockSpec(memory_space=pltpu.SMEM),             # conv taps (k,), 1/HW folded in
            pl.BlockSpec(memory_space=pltpu.SMEM),             # conv bias (1,)
            w_spec,                                            # 1x1 conv weight
            pl.BlockSpec((Bt, C, HWp), lambda b: (b, 0, 0)),   # x
        ],
        out_specs=pl.BlockSpec((Bt, C, HWp), lambda b: (b, 0, 0)),
        compiler_params=pltpu.CompilerParams(
            dimension_semantics=("parallel",),
            vmem_limit_bytes=vmem_limit,
        ),
        cost_estimate=cost,
    )(taps, bias, w_arg, x)

    if pad_hw:
        out = out[:, :, :HW]
    return out.reshape(B, C, H, W)


def ef_attention_ref(x, w1d, b1d, w1x1, kernel_size=3):
    """Plain-JAX reference mirroring the PyTorch forward."""
    B, C, H, W = x.shape
    pad = (kernel_size - 1) // 2
    m = jnp.mean(x, axis=(2, 3))                               # (B, C)  == gap + squeeze
    mp = jnp.pad(m, ((0, 0), (pad, pad)))
    y = jnp.zeros((B, C), jnp.float32)
    for k in range(kernel_size):
        y = y + w1d[k] * mp[:, k:k + C]
    y = jax.nn.sigmoid(y + b1d[0])                             # (B, C)  channel attn
    q = jax.nn.sigmoid(jnp.einsum('c,bchw->bhw', w1x1, x))     # (B, H, W) spatial attn
    return x * y[:, :, None, None] + x * q[:, None, :, :]


if __name__ == "__main__":
    B, C, H, W = 2, 4, 16, 16
    kernel_size = 3

    key = jax.random.PRNGKey(0)
    k_x, k_w1d, k_b1d, k_w1x1 = jax.random.split(key, 4)

    x = jax.random.normal(k_x, (B, C, H, W), jnp.float32)
    # Conv1d(1, 1, k=3): weight (1,1,3) -> (3,), bias (1,)
    w1d = jax.random.normal(k_w1d, (kernel_size,), jnp.float32) * 0.5
    b1d = jax.random.normal(k_b1d, (1,), jnp.float32) * 0.1
    # Conv2d(C, 1, 1, bias=False): weight (1,C,1,1) -> (C,)
    w1x1 = jax.random.normal(k_w1x1, (C,), jnp.float32) * 0.5

    out = ef_attention(x, w1d, b1d, w1x1, kernel_size)
    out = jax.block_until_ready(out)

    ref = ef_attention_ref(x, w1d, b1d, w1x1, kernel_size)
    assert out.shape == (B, C, H, W)
    assert jnp.allclose(out, ref, atol=1e-5, rtol=1e-5), "mismatch vs reference"

    print("KERNEL_OK")
</pallas_src>

<mosaic_0001>
module attributes {stable_mosaic.version = 11 : i64} {
  func.func @ef_attention_kernel(%arg0: i32, %arg1: memref<3xf32, #tpu.memory_space<smem>>, %arg2: memref<1xf32, #tpu.memory_space<smem>>, %arg3: memref<4xf32, #tpu.memory_space<smem>>, %arg4: memref<1x4x256xf32, #tpu.memory_space<vmem>>, %arg5: memref<1x4x256xf32, #tpu.memory_space<vmem>>) attributes {dimension_semantics = [#tpu.dimension_semantics<parallel>], iteration_bounds = array<i64: 2>, scalar_prefetch = 0 : i64, scratch_operands = 0 : i64, tpu.core_type = #tpu.core_type<tc>, window_params = [{transform_indices = @transform_0, window_bounds = array<i64: 3>}, {transform_indices = @transform_1, window_bounds = array<i64: 1>}, {transform_indices = @transform_2, window_bounds = array<i64: 4>}, {transform_indices = @transform_3, window_bounds = array<i64: 1, 4, 256>}, {transform_indices = @transform_4, window_bounds = array<i64: 1, 4, 256>}]} {
    %c0 = arith.constant 0 : index
    %c0_0 = arith.constant 0 : index
    %c0_1 = arith.constant 0 : index
    %0 = vector.load %arg4[%c0, %c0_0, %c0_1] : memref<1x4x256xf32, #tpu.memory_space<vmem>>, vector<1x4x256xf32>
    %cst = arith.constant dense<0.000000e+00> : vector<1x4xf32>
    %1 = vector.multi_reduction <add>, %0, %cst [2] : vector<1x4x256xf32> to vector<1x4xf32>
    %2 = vector.shape_cast %1 : vector<1x4xf32> to vector<1x4x1xf32>
    %cst_2 = arith.constant 0.000000e+00 : f32
    %3 = vector.broadcast %cst_2 : f32 to vector<1x1x1xf32>
    %4 = tpu.concatenate %3, %2, %3 in 1 : vector<1x1x1xf32>, vector<1x4x1xf32>, vector<1x1x1xf32> -> vector<1x6x1xf32>
    %c0_3 = arith.constant 0 : index
    %5 = memref.load %arg2[%c0_3] : memref<1xf32, #tpu.memory_space<smem>>
    %c0_4 = arith.constant 0 : index
    %6 = memref.load %arg1[%c0_4] : memref<3xf32, #tpu.memory_space<smem>>
    %7 = vector.extract_strided_slice %4 {offsets = [0, 0, 0], sizes = [1, 4, 1], strides = [1, 1, 1]} : vector<1x6x1xf32> to vector<1x4x1xf32>
    %8 = vector.broadcast %6 : f32 to vector<1x4x1xf32>
    %9 = arith.mulf %8, %7 : vector<1x4x1xf32>
    %10 = vector.broadcast %5 : f32 to vector<1x4x1xf32>
    %11 = arith.addf %10, %9 : vector<1x4x1xf32>
    %c1 = arith.constant 1 : index
    %12 = memref.load %arg1[%c1] : memref<3xf32, #tpu.memory_space<smem>>
    %13 = vector.extract_strided_slice %4 {offsets = [0, 1, 0], sizes = [1, 4, 1], strides = [1, 1, 1]} : vector<1x6x1xf32> to vector<1x4x1xf32>
    %14 = vector.broadcast %12 : f32 to vector<1x4x1xf32>
    %15 = arith.mulf %14, %13 : vector<1x4x1xf32>
    %16 = arith.addf %11, %15 : vector<1x4x1xf32>
    %c2 = arith.constant 2 : index
    %17 = memref.load %arg1[%c2] : memref<3xf32, #tpu.memory_space<smem>>
    %18 = vector.extract_strided_slice %4 {offsets = [0, 2, 0], sizes = [1, 4, 1], strides = [1, 1, 1]} : vector<1x6x1xf32> to vector<1x4x1xf32>
    %19 = vector.broadcast %17 : f32 to vector<1x4x1xf32>
    %20 = arith.mulf %19, %18 : vector<1x4x1xf32>
    %21 = arith.addf %16, %20 : vector<1x4x1xf32>
    %22 = arith.negf %21 : vector<1x4x1xf32>
    %23 = math.exp %22 : vector<1x4x1xf32>
    %cst_5 = arith.constant 1.000000e+00 : f32
    %24 = vector.broadcast %cst_5 : f32 to vector<1x4x1xf32>
    %25 = arith.addf %24, %23 : vector<1x4x1xf32>
    %26 = arith.divf %24, %25 : vector<1x4x1xf32>
    %c0_6 = arith.constant 0 : index
    %27 = memref.load %arg3[%c0_6] : memref<4xf32, #tpu.memory_space<smem>>
    %c0_7 = arith.constant 0 : index
    %c0_8 = arith.constant 0 : index
    %c0_9 = arith.constant 0 : index
    %28 = vector.load %arg4[%c0_7, %c0_8, %c0_9] : memref<1x4x256xf32, #tpu.memory_space<vmem>>, vector<1x1x256xf32>
    %29 = vector.broadcast %27 : f32 to vector<1x1x256xf32>
    %30 = arith.mulf %29, %28 : vector<1x1x256xf32>
    %c1_10 = arith.constant 1 : index
    %31 = memref.load %arg3[%c1_10] : memref<4xf32, #tpu.memory_space<smem>>
    %c0_11 = arith.constant 0 : index
    %c1_12 = arith.constant 1 : index
    %c0_13 = arith.constant 0 : index
    %32 = vector.load %arg4[%c0_11, %c1_12, %c0_13] : memref<1x4x256xf32, #tpu.memory_space<vmem>>, vector<1x1x256xf32>
    %33 = vector.broadcast %31 : f32 to vector<1x1x256xf32>
    %34 = arith.mulf %33, %32 : vector<1x1x256xf32>
    %35 = arith.addf %30, %34 : vector<1x1x256xf32>
    %c2_14 = arith.constant 2 : index
    %36 = memref.load %arg3[%c2_14] : memref<4xf32, #tpu.memory_space<smem>>
    %c0_15 = arith.constant 0 : index
    %c2_16 = arith.constant 2 : index
    %c0_17 = arith.constant 0 : index
    %37 = vector.load %arg4[%c0_15, %c2_16, %c0_17] : memref<1x4x256xf32, #tpu.memory_space<vmem>>, vector<1x1x256xf32>
    %38 = vector.broadcast %36 : f32 to vector<1x1x256xf32>
    %39 = arith.mulf %38, %37 : vector<1x1x256xf32>
    %40 = arith.addf %35, %39 : vector<1x1x256xf32>
    %c3 = arith.constant 3 : index
    %41 = memref.load %arg3[%c3] : memref<4xf32, #tpu.memory_space<smem>>
    %c0_18 = arith.constant 0 : index
    %c3_19 = arith.constant 3 : index
    %c0_20 = arith.constant 0 : index
    %42 = vector.load %arg4[%c0_18, %c3_19, %c0_20] : memref<1x4x256xf32, #tpu.memory_space<vmem>>, vector<1x1x256xf32>
    %43 = vector.broadcast %41 : f32 to vector<1x1x256xf32>
    %44 = arith.mulf %43, %42 : vector<1x1x256xf32>
    %45 = arith.addf %40, %44 : vector<1x1x256xf32>
    %46 = arith.negf %45 : vector<1x1x256xf32>
    %47 = math.exp %46 : vector<1x1x256xf32>
    %cst_21 = arith.constant 1.000000e+00 : f32
    %48 = vector.broadcast %cst_21 : f32 to vector<1x1x256xf32>
    %49 = arith.addf %48, %47 : vector<1x1x256xf32>
    %50 = arith.divf %48, %49 : vector<1x1x256xf32>
    %51 = vector.broadcast %26 : vector<1x4x1xf32> to vector<1x4x256xf32>
    %52 = vector.broadcast %50 : vector<1x1x256xf32> to vector<1x4x256xf32>
    %53 = arith.addf %51, %52 : vector<1x4x256xf32>
    %c0_22 = arith.constant 0 : index
    %c0_23 = arith.constant 0 : index
    %c0_24 = arith.constant 0 : index
    %54 = vector.load %arg4[%c0_22, %c0_23, %c0_24] : memref<1x4x256xf32, #tpu.memory_space<vmem>>, vector<1x4x256xf32>
    %55 = arith.mulf %54, %53 : vector<1x4x256xf32>
    %c0_25 = arith.constant 0 : index
    %c0_26 = arith.constant 0 : index
    %c0_27 = arith.constant 0 : index
    %56 = vector.load %arg5[%c0_25, %c0_26, %c0_27] : memref<1x4x256xf32, #tpu.memory_space<vmem>>, vector<1x4x256xf32>
    tpu.vector_store %arg5[%c0_25, %c0_26, %c0_27], %55 {strides = array<i32>} : memref<1x4x256xf32, #tpu.memory_space<vmem>>, vector<1x4x256xf32>,
    return
  }
  func.func @transform_0(%arg0: i32) -> i32 {
    %c0_i32 = arith.constant 0 : i32
    %c0_i32_0 = arith.constant 0 : i32
    return %c0_i32 : i32
  }
  func.func @transform_1(%arg0: i32) -> i32 {
    %c0_i32 = arith.constant 0 : i32
    %c0_i32_0 = arith.constant 0 : i32
    return %c0_i32 : i32
  }
  func.func @transform_2(%arg0: i32) -> i32 {
    %c0_i32 = arith.constant 0 : i32
    %c0_i32_0 = arith.constant 0 : i32
    return %c0_i32 : i32
  }
  func.func @transform_3(%arg0: i32) -> (i32, i32, i32) {
    %c0_i32 = arith.constant 0 : i32
    %c0_i32_0 = arith.constant 0 : i32
    %c0_i32_1 = arith.constant 0 : i32
    return %arg0, %c0_i32, %c0_i32_0 : i32, i32, i32
  }
  func.func @transform_4(%arg0: i32) -> (i32, i32, i32) {
    %c0_i32 = arith.constant 0 : i32
    %c0_i32_0 = arith.constant 0 : i32
    %c0_i32_1 = arith.constant 0 : i32
    return %arg0, %c0_i32, %c0_i32_0 : i32, i32, i32
  }
}

</mosaic_0001>

<bundles_post_ra>
// kernel: tpu_custom_call.1
= control target key start
LH: loop header
LB: loop body
LE: loop exit
PB: predicated region body
PF: predicated region fallthrough
CT: control target
= control target key end

     0   :  { %s927_s0 = inlined_call_operand.vmem [shape: f32[3], index: 0, kind: input, shape index: {}]   ;;  %s928_s1 = inlined_call_operand.<no memory space> [shape: f32[1], index: 1, kind: input, shape index: {}]   ;;  %s929_s2 = inlined_call_operand.vmem [shape: f32[4], index: 2, kind: input, shape index: {}]   ;;  %s930_s3 = inlined_call_operand.hbm [shape: f32[2,4,256], index: 3, kind: input, shape index: {}]   ;;  %s931_s4 = inlined_call_operand.hbm [shape: f32[2,4,256], index: 4, kind: output, shape index: {}]  }
   0x1   :  { %9 = sst [smem:[#allocation2]] %s928_s1 }
   0x2   :  { %10 = vsyncpa [#allocation6], 0 }
   0x3   :  { %11 = vsyncpa [#allocation8], 0 }
   0x4   :  { %12 = vsyncpa [#allocation4], 0 }
   0x5   :  { %14 = vsyncpa [#allocation4 + $0x1], 0 }
   0x6   :  { %15 = vsyncpa [#allocation5], 0 }
   0x7   :  { %17 = vsyncpa [#allocation5 + $0x1], 0  ;;  %s721_s17 = smov 0   ;;  %s723_s18 = smov 0  }
   0x8   :  { %s725_s19 = smov 0   ;;  %s727_s20 = smov 0  }
   0x9 LB: > { %s742_s1 = sadd.s32 4294967295, %s686_s20   ;;  %s444_s21 = sadd.s32 4294967294, %s686_s20   ;;  %s686_s20 = sphi %s727_s20, %s953_s20   ;;  %s682_s19 = sphi %s725_s19, %s952_s19   ;;  %s678_s18 = sphi %s723_s18, %s951_s18   ;;  %s674_s17 = sphi %s721_s17, %s950_s17  }
   0xa   : > { %p106_p0 = scmp.ne.s32.totalorder %s678_s18, %s674_s17  ;;  %p932_p1 = scmp.eq.s32.totalorder %s742_s1, 0 }
   0xb   : > { %p136_p3 = scmp.eq.s32.totalorder %s444_s21, 1  ;;  %p445_p5 = scmp.ge.s32.totalorder %s686_s20, 1 }
   0xc   : > { %p751_p4 = por %p932_p1, %p106_p0  ;;  %p143_p7 = scmp.lt.s32.totalorder %s686_s20, 3 }
   0xd   : > { %p756_p6 = por %p136_p3, %p106_p0  ;;  %s156_s26 = sshll.u32 %s927_s0, 4  ;;  %s157_s26 = int_to_ptr.vmem [resolvable:$true] %s156_s26 }
   0xe   : > { %s935_s22 = scalar_select %p751_p4, 1, 0 }
   0xf   : > { %s936_s23 = scalar_select %p756_p6, 1, 0 }
  0x10   : > { %p764_p8 = pnand %p445_p5, %p143_p7  ;;  %s170_s30 = sshll.u32 %s929_s2, 4  ;;  %s171_s30 = int_to_ptr.vmem [resolvable:$true] %s170_s30 }
  0x11   : > { %s781_s6 = sadd.s32 1, %s686_s20   ;;  %s552_s8 = scalar_lea.vmem %s157_s26, 16 }
  0x12   : > { %s937_s27 = scalar_select %p764_p8, 1, 0 }
  0x13   : > { %p486_p10 = pneg %p764_p8  ;;  %s90_s7 = ssub.s32 %s686_s20, %s781_s6 }
  0x14   : > { %p553_p12 = scmp.ne.s32.totalorder %s157_s26, %s552_s8  ;;  %p560_p5 = scmp.lt.s32.totalorder %s157_s26, %s157_s26 }
  0x15   : > { %p776_p11 = pnand %p486_p10, %p932_p1  ;;  %p561_p7 = scmp.lt.s32.totalorder %s552_s8, %s552_s8 }
  0x17   : > { %p554_p13 = pneg %p776_p11  ;;  %p562_p9 = por %p561_p7, %p560_p5 }
  0x19   : > { %p555_p0 = pnand %p554_p13, %p553_p12 }
  0x1b   : > { %p556_p3 = pneg %p555_p0 }
  0x1d   : > { %p563_p2 = pnand %p562_p9, %p556_p3 }
  0x1f   : > { %566 = shalt.err (!%p563_p2)
}
  0x20   : > { %s688_s9 = smov [#allocation3]   ;;  %s567_s10 = scalar_lea.vmem %s171_s30, 16 }
  0x21   : > { %489 = dma.vmem_to_smem (!%p776_p11), %s157_s26, 16, %s688_s9, [#allocation6]  }
  0x22   : > { %p568_p10 = scmp.ne.s32.totalorder %s171_s30, %s567_s10  ;;  %p575_p4 = scmp.lt.s32.totalorder %s171_s30, %s171_s30 }
  0x23   : > { %p576_p8 = scmp.lt.s32.totalorder %s567_s10, %s567_s10 }
  0x24   : > { %p570_p1 = pnand %p568_p10, %p554_p13 }
  0x25   : > { %p577_p12 = por %p576_p8, %p575_p4 }
  0x26   : > { %p571_p6 = pneg %p570_p1 }
  0x28   : > { %p578_p0 = pnand %p577_p12, %p571_p6 }
  0x2a   : > { %581 = shalt.err (!%p578_p0)
}
  0x2b   : > { %s689_s11 = smov [#allocation7]   ;;  %p91_p2 = scmp.eq.s32.totalorder %s90_s7, 0 }
  0x2c   : > { %492 = dma.vmem_to_smem (!%p776_p11), %s171_s30, 16, %s689_s11, [#allocation8]  }
  0x2d   : > { %s93_s12 = sadd.s32 1, %s682_s19  ;;  %p100_p1 = scmp.ne.s32.totalorder %s682_s19, %s678_s18 }
  0x2e   : > { %p101_p9 = scmp.eq.s32.totalorder %s686_s20, 0  ;;  %p939_p6 = scmp.eq.s32.totalorder %s742_s1, 1 }
  0x2f   : > { %s796_s13 = scalar_select %p91_p2, %s682_s19, %s93_s12  }
  0x30   : > { %p102_p4 = por %p101_p9, %p100_p1  ;;  %p800_p8 = por %p939_p6, %p100_p1 }
  0x31   : > { %p503_p13 = scmp.lt.s32.totalorder %s686_s20, 2  ;;  %s181_s15 = sand.u32 1, %s682_s19  }
  0x32   : > { %s449_s16 = sshll.u32 %s181_s15, 3  ;;  %s472_s21 = sshll.u32 %s686_s20, 7 }
  0x33   : > { %s810_s26 = scalar_lea.hbm %s930_s3, %s472_s21  ;;  %s185_s28 = scalar_lea.vmem [#allocation9], %s449_s16 }
  0x34   : > { %s193_s29 = sshll.u32 %s185_s28, 4  ;;  %p814_p11 = pnand %p503_p13, %p102_p4  ;;  %s812_s29 = int_to_ptr.vmem [resolvable:$true] %s193_s29 }
  0x35   : > { %s182_s5 = scalar_lea.sflag [#allocation4], %s181_s15  ;;  %s582_s7 = scalar_lea.hbm %s810_s26, 128 }
  0x36   : > { %p583_p3 = scmp.ne.s32.totalorder %s810_s26, %s582_s7  ;;  %p584_p5 = pneg %p814_p11 }
  0x37   : > { %s587_s10 = scalar_lea.hbm %s930_s3, 256  ;;  %p588_p12 = scmp.lt.u32.totalorder %s810_s26, %s930_s3 }
  0x38   : > { %p585_p7 = pnand %p584_p5, %p583_p3  ;;  %p589_p0 = scmp.lt.u32.totalorder %s587_s10, %s582_s7 }
  0x39   : > { %p591_p1 = scmp.lt.u32.totalorder %s582_s7, %s810_s26 }
  0x3a   : > { %p586_p10 = pneg %p585_p7  ;;  %p590_p2 = por %p589_p0, %p588_p12 }
  0x3c   : > { %p592_p9 = por %p591_p1, %p590_p2 }
  0x3e   : > { %p593_p4 = pnand %p592_p9, %p586_p10 }
  0x40   : > { %596 = shalt.err (!%p593_p4)
}
  0x41   : > { %s597_s15 = scalar_lea.vmem %s812_s29, 128  ;;  %s690_s16 = smov [#allocation9]  }
  0x42   : > { %p598_p6 = scmp.ne.s32.totalorder %s812_s29, %s597_s15  ;;  %s602_s21 = sshll.u32 %s690_s16, 4  ;;  %s603_s21 = int_to_ptr.vmem [resolvable:$false] %s602_s21 }
  0x43   : > { %s604_s24 = scalar_lea.vmem %s603_s21, 256  ;;  %p605_p7 = scmp.lt.s32.totalorder %s812_s29, %s603_s21 }
  0x44   : > { %p600_p13 = pnand %p598_p6, %p584_p5  ;;  %p606_p12 = scmp.lt.s32.totalorder %s604_s24, %s597_s15 }
  0x46   : > { %p601_p3 = pneg %p600_p13  ;;  %p607_p0 = por %p606_p12, %p605_p7 }
  0x48   : > { %p608_p2 = pnand %p607_p0, %p601_p3 }
  0x4a   : > { %611 = shalt.err (!%p608_p2)
}
  0x4b   : > { %496 = dma.hbm_to_vmem [thread:$0]  (!%p814_p11), %s810_s26, 128, %s812_s29, %s182_s5  }
  0x4c   : > { %p942_p10 = scmp.ne.s32.totalorder %s937_s27, 0 }
  0x4d   : > { %p943_p5 = scmp.eq.s32.totalorder (!%p942_p10), %s742_s1, 0 }
  0x4e   : > { %202 = sbr.rel (%p942_p10) target bundleno = 430 (0x1ae), region = 36 }
  0x55   : > { %657 = dma.done.wait (%p943_p5), [#allocation6], 16   ;;  %p944_p1 = pmov %p943_p5 }
  0x57   : > { %659 = vsyncadd (%p944_p1), [#allocation6], 4294967280  ;;  %p945_p9 = pmov %p944_p1 }
  0x58   : > { %p946_p4 = pmov %p944_p1 }
  0x59   : > { %661 = dma.done.wait (%p945_p9), [#allocation8], 16  }
  0x5a   : > { %663 = vsyncadd (%p946_p4), [#allocation8], 4294967280  ;;  %s854_s25 = sand.u32 1, %s678_s18   ;;  %p947_p11 = scmp.ne.s32.totalorder %s935_s22, 0 }
  0x5b   : > { %s455_s27 = sshll.u32 %s854_s25, 3  ;;  %s213_s26 = scalar_lea.sflag [#allocation4], %s854_s25 }
  0x5c   : > { %s860_s28 = scalar_lea.vmem [#allocation9], %s455_s27 }
  0x5d   : > { %665 = dma.done.wait (%p947_p11), %s213_s26, 128  }
  0x5e   : > { %667 = vsyncadd (%p947_p11), %s213_s26, 4294967168 }
  0x5f   : > { %221 = sfence }
  0x60   : > { %v867_v0 = vld [vmem:[%s860_s28] sm:$0xff]  ;;  %vm246_vm0 = vcmask 1043456   ;;  %v691_v5 = vmov 0   ;;  %s260_s29 = sld [smem:[#allocation3]]  ;;  %s457_s30 = sld [smem:[#allocation3 + $0x1]]  ;;  %vm255_vm1 = vcmask 1040384   ;;  %v319_v44 = vlaneseq }
  0x61   : > { %v244_v1 = vcombine.high %v867_v0, %v867_v0  ;;  %v247_v2 = vsel %vm246_vm0, %v867_v0, 0.0  ;;  %542 = vset.pattern.permute.xlu0 %v691_v5  ;;  %s458_s5 = sld [smem:[#allocation3 + $0x2]]  ;;  %s259_s22 = sld [smem:[#allocation2]]  ;;  %vm257_vm2 = vcmask 1044480  }
  0x62   : > { %s285_s7 = sld [smem:[#allocation7]]  ;;  %s460_s8 = sld [smem:[#allocation7 + $0x1]]  ;;  %v286_v26 = vld [vmem:[%s860_s28] ss:$4 sm:$0x3]  ;;  %v320_v45 = vshrl.u32 %v319_v44, 7 }
  0x63   : > { %v248_v3 = vsel %vm246_vm0, %v244_v1, 0.0  ;;  %s462_s9 = sld [smem:[#allocation7 + $0x2]]  ;;  %v461_v28 = vld [vmem:[%s860_s28 + $0x1] ss:$4 sm:$0x3]  ;;  %s464_s10 = sld [smem:[#allocation7 + $0x3]] }
  0x64   : > { %v249_v4 = vadd.f32 %v248_v3, %v247_v2  ;;  %v463_v32 = vld [vmem:[%s860_s28 + $0x2] ss:$4 sm:$0x3]  ;;  %v465_v36 = vld [vmem:[%s860_s28 + $0x3] ss:$4 sm:$0x3] }
  0x65   : > { %v321_v46 = vsub.s32 0, %v320_v45  ;;  %v325_v47 = vsub.s32 1, %v320_v45  ;;  %s473_s11 = sshll.u32 %s742_s1, 7  ;;  %s241_s12 = scalar_lea.vmem [#allocation10], %s455_s27 }
  0x66   : > { %250 = vadd.xlane.f32.xlu0 %v249_v4  ;;  %v261_v8 = vstv %s260_s29  ;;  %v266_v9 = vstv %s457_s30  ;;  %s352_s15 = sshll.u32 %s241_s12, 4  ;;  %s883_s24 = scalar_lea.hbm %s931_s4, %s473_s11  ;;  %s885_s15 = int_to_ptr.vmem [resolvable:$true] %s352_s15 }
  0x67   : > { %v273_v10 = vstv %s458_s5  ;;  %v263_v12 = vstv %s259_s22  ;;  %s338_s26 = scalar_lea.sflag [#allocation5], %s854_s25  ;;  %s612_s28 = scalar_lea.vmem %s885_s15, 128 }
  0x68   : > { %v287_v27 = vstv %s285_s7  ;;  %v292_v29 = vstv %s460_s8  ;;  %p613_p6 = scmp.ne.s32.totalorder %s885_s15, %s612_s28  ;;  %s692_s1 = smov [#allocation10]  }
  0x69   : > { %v288_v30 = vmul.f32 %v287_v27, %v286_v26  ;;  %v293_v31 = vmul.f32 %v461_v28, %v292_v29  ;;  %v298_v33 = vstv %s462_s9  ;;  %v304_v37 = vstv %s464_s10  ;;  %s616_s27 = sshll.u32 %s692_s1, 4  ;;  %s617_s27 = int_to_ptr.vmem [resolvable:$false] %s616_s27 }
  0x6a   : > { %v299_v35 = vmul.f32 %v463_v32, %v298_v33  ;;  %v305_v39 = vmul.f32 %v465_v36, %v304_v37  ;;  %p614_p13 = pnand %p613_p6, %p800_p8  ;;  %s618_s29 = scalar_lea.vmem %s617_s27, 256 }
  0x6b   : > { %v294_v34 = vadd.f32 %v293_v31, %v288_v30  ;;  %p619_p7 = scmp.lt.s32.totalorder %s885_s15, %s617_s27  ;;  %p620_p12 = scmp.lt.s32.totalorder %s618_s29, %s612_s28 }
  0x6c   : > { %p615_p3 = pneg %p614_p13 }
  0x6d   : > { %v300_v38 = vadd.f32 %v299_v35, %v294_v34  ;;  %p621_p0 = por %p620_p12, %p619_p7 }
  0x6f   : > { %v306_v40 = vadd.f32 %v305_v39, %v300_v38  ;;  %p622_p2 = pnand %p621_p0, %p615_p3 }
  0x71   : > { %v466_v41 = vmul.f32 -1.442695, %v306_v40 }
  0xf3   : > { %v251_v6 = vpop.xlane.xlu0 %250 }
  0xf4   : > { %v253_v7 = vrot.slane %v251_v6, 7 }
  0xf6   : > { %v256_v11 = vsel %vm255_vm1, 0.0, %v253_v7 }
  0xf7   : > { %v258_v13 = vsel %vm257_vm2, %v256_v11, 0.0 }
  0xf8   : > { %v262_v14 = vmul.f32 %v261_v8, %v258_v13  ;;  %v267_v15 = vmul.f32 %v266_v9, %v258_v13  ;;  %v274_v16 = vmul.f32 %v273_v10, %v258_v13 }
  0xfa   : > { %v264_v17 = vadd.f32 %v263_v12, %v262_v14  ;;  %v269_v18 = vrot.slane %v267_v15, 1  ;;  %v276_v20 = vrot.slane %v274_v16, 2 }
  0xfc   : > { %v271_v19 = vadd.f32 %v269_v18, %v264_v17 }
  0xfe   : > { %v278_v21 = vadd.f32 %v276_v20, %v271_v19 }
 0x100   : > { %v459_v22 = vmul.f32 -1.442695, %v278_v21 }
 0x102   : > { %544 = vpow2.f32 %v459_v22 }
 0x10c   : > { %v545_v23 = vpop.eup %544 }
 0x10d   : > { %v282_v24 = vadd.f32 1.0, %v545_v23 }
 0x10f   : > { %546 = vrcp.f32 %v282_v24 }
 0x110   : > { %548 = vpow2.f32 %v466_v41 }
 0x119   : > { %v547_v25 = vpop.eup %546 }
 0x11a   : > { %315 = vperm.xlu0 %542, %v547_v25   ;;  %v549_v42 = vpop.eup %548 }
 0x11b   : > { %v310_v43 = vadd.f32 1.0, %v549_v42 }
 0x11d   : > { %550 = vrcp.f32 %v310_v43 }
 0x127   : > { %v551_v48 = vpop.eup %550 }
 0x128   : > { %v322_v49 = vrot.slane %v551_v48, %v321_v46  ;;  %v326_v50 = vrot.slane %v551_v48, %v325_v47 }
 0x199   : > { %v316_v51 = vpop.permute.xlu0 %315 }
 0x19a   : > { %v329_v52 = vadd.f32 %v322_v49, %v316_v51  ;;  %v330_v53 = vadd.f32 %v326_v50, %v316_v51 }
 0x19c   : > { %v333_v54 = vcombine.low %v329_v52, %v330_v53 }
 0x19e   : > { %v335_v55 = vmul.f32 %v333_v54, %v867_v0 }
 0x1a0   : > { %336 = vst [vmem:[%s241_s12] sm:$0xff] %v335_v55 }
 0x1a1   : > { %625 = shalt.err (!%p622_p2)
}
 0x1a2   : > { %s626_s25 = scalar_lea.hbm %s883_s24, 128  ;;  %s630_s22 = scalar_lea.hbm %s931_s4, 256 }
 0x1a3   : > { %p627_p10 = scmp.ne.s32.totalorder %s883_s24, %s626_s25  ;;  %p631_p9 = scmp.lt.u32.totalorder %s883_s24, %s931_s4 }
 0x1a4   : > { %p632_p4 = scmp.lt.u32.totalorder %s630_s22, %s626_s25  ;;  %p634_p6 = scmp.lt.u32.totalorder %s626_s25, %s883_s24 }
 0x1a5   : > { %p628_p5 = pnand %p627_p10, %p800_p8 }
 0x1a6   : > { %p633_p11 = por %p632_p4, %p631_p9 }
 0x1a7   : > { %p629_p1 = pneg %p628_p5 }
 0x1a8   : > { %p635_p13 = por %p634_p6, %p633_p11 }
 0x1aa   : > { %p636_p3 = pnand %p635_p13, %p629_p1 }
 0x1ac   : > { %639 = shalt.err (!%p636_p3)
}
 0x1ad   : > { %484 = dma.vmem_to_hbm [thread:$0]  (%p800_p8), %s885_s15, 128, %s883_s24, %s338_s26  }
 0x1ae PF: > { %s364_s9 = sand.u32 1, %s674_s17   ;;  %p948_p7 = scmp.ne.s32.totalorder %s936_s23, 0 }
 0x1af   : > { %p949_p12 = scmp.ge.s32.totalorder %s686_s20, 2  ;;  %s365_s10 = scalar_lea.sflag [#allocation5], %s364_s9 }
 0x1b1   : > { %p498_p0 = pnand %p949_p12, %p948_p7 }
 0x1b3   : > { %669 = dma.done.wait (!%p498_p0), %s365_s10, 128  }
 0x1b4   : > { %671 = vsyncadd (!%p498_p0), %s365_s10, 4294967168  ;;  %p20_p2 = scmp.ge.s32.totalorder %s781_s6, 4   ;;  %s950_s17 = smov %s678_s18 }
 0x1b5   : > { %s951_s18 = smov %s682_s19  ;;  %s952_s19 = smov %s796_s13 }
 0x1b6   : > { %s953_s20 = smov %s781_s6  ;;  %22 = sbr.rel (!%p20_p2) target bundleno = 9 (0x9), region = 93 }
 0x1bd   :  { %370 = vsyncpa [#allocation4], 1 }
 0x1be   :  { %372 = vsyncpa [#allocation4 + $0x1], 1 }
 0x1bf   :  { %373 = vsyncpa [#allocation5], 1 }
 0x1c0   :  { %375 = vsyncpa [#allocation5 + $0x1], 1 }
 0x1c1   :  { %376 = vsyncpa [#allocation6], 1 }
 0x1c2   :  { %378 = vsyncpa [#allocation6 + $0x1], 1 }
 0x1c3   :  { %379 = vsyncpa [#allocation8], 1 }

</bundles_post_ra>
